<compile_context>
chip_gen: v6e
topology: v6e:2x2x1
jax: 0.10.0
libtpu: 0.0.40
codegen_flags: <defaults>
</compile_context>

<pallas_src>
import functools
import math

import jax
import jax.numpy as jnp
from jax import lax
from jax.experimental import pallas as pl
from jax.experimental.pallas import tpu as pltpu


def _round_up(x, m):
    return (x + m - 1) // m * m


def _pick_divisor(total, candidates, default):
    for c in candidates:
        if c <= total and total % c == 0:
            return c
    return default


# --------- kernel 1: L2-normalize, fold 1/sqrt(T), bf16 cast, per-row positives -------

def _prep_kernel(zi_ref, zj_ref, zn_ref, pos_ref, *, inv_sqrt_temp):
    zi = zi_ref[...].astype(jnp.float32)
    zj = zj_ref[...].astype(jnp.float32)

    def _normalize(x):
        ss = jnp.sum(x * x, axis=1, keepdims=True)
        # F.normalize(dim=1, eps=1e-12) == x * rsqrt(max(ss, 1e-24)); fold 1/sqrt(T)
        # into both halves so the similarity matrix already carries the 1/T scale.
        return x * (lax.rsqrt(jnp.maximum(ss, jnp.float32(1e-24)))
                    * jnp.float32(inv_sqrt_temp))

    zi_n = _normalize(zi).astype(jnp.bfloat16)   # bf16 MXU operands
    zj_n = _normalize(zj).astype(jnp.bfloat16)

    # Feature dim is pre-padded to a multiple of 128 in the wrapper -> full-block,
    # lane-dense stores (no masked partial stores, no per-step zero fill).
    zn_ref[0, :, :] = zi_n
    zn_ref[1, :, :] = zj_n

    # Positive logit for batch row b: sim[b, b+B] == sim[b+B, b] == <zi_n[b], zj_n[b]>
    # (already includes 1/T). bf16 operands, f32 accumulate — same numerics as the MXU.
    p = jnp.sum(zi_n.astype(jnp.float32) * zj_n.astype(jnp.float32),
                axis=1, keepdims=True)
    pos_ref[0, :, :] = p
    pos_ref[1, :, :] = p


# --------- kernel 2: tiled similarity + fixed-max logsumexp ---------------------------

def _ntxent_tile_kernel(q_ref, k_ref, pos_ref, out_ref, l_sc, *,
                        tm, tk, lw, inv_t, pad_corr):
    i = pl.program_id(0)
    k = pl.program_id(1)
    n_chunks = tk // lw

    @pl.when(k == 0)
    def _():
        l_sc[...] = jnp.zeros_like(l_sc)

    # (tm, tk) similarity tile on the MXU: bf16 inputs, f32 accumulation, no transpose.
    s = lax.dot_general(q_ref[...], k_ref[...],
                        dimension_numbers=(((1,), (1,)), ((), ())),
                        preferred_element_type=jnp.float32)

    # Fixed analytic max m = 1/T: |s| <= 1/T, so exp(s - 1/T) never overflows.
    e = jnp.exp(s - jnp.float32(inv_t))

    def _accumulate(e_tile):
        # Lane-partial accumulation: plain VALU adds into the (tm, lw) accumulator; the
        # cross-lane XLU reduce happens only once per row tile (in the finalize step).
        acc = l_sc[...]
        for c in range(n_chunks):
            acc = acc + e_tile[:, c * lw:(c + 1) * lw]
        l_sc[...] = acc

    row_start = i * tm
    col_start = k * tk
    has_diag = jnp.logical_and(row_start < col_start + tk,
                               col_start < row_start + tm)

    @pl.when(jnp.logical_not(has_diag))
    def _():
        _accumulate(e)                       # off-diagonal tiles: no masking work

    @pl.when(has_diag)
    def _():
        row_g = row_start + lax.broadcasted_iota(jnp.int32, (tm, tk), 0)
        col_g = col_start + lax.broadcasted_iota(jnp.int32, (tm, tk), 1)
        _accumulate(jnp.where(row_g == col_g, jnp.float32(0.0), e))

    @pl.when(k == pl.num_programs(1) - 1)
    def _():
        row_sum = jnp.sum(l_sc[...], axis=1, keepdims=True)
        if pad_corr != 0.0:
            # Zero-padded key columns contribute exactly exp(-1/T) each; subtract the
            # statically-known total once instead of masking every tile.
            row_sum = row_sum - jnp.float32(pad_corr)
        out_ref[...] = (jnp.float32(inv_t) + jnp.log(row_sum)) - pos_ref[...]


# --------- wrapper ---------------------------------------------------------------------

def ntxent_loss(z_i, z_j, temperature=0.5):
    assert z_i.ndim == 2 and z_i.shape == z_j.shape
    b, d = z_i.shape
    d_pad = _round_up(d, 128)

    # ---- tile sizing ----
    b_pad = _round_up(b, 8)
    if 2 * b_pad <= 1024:
        # Whole problem fits one (n x n) tile: single pass, no online accumulation.
        n = 2 * b_pad
        tm = n
        tk = n
    else:
        # Pad the batch only to a multiple of 128 (not to the tile size); use large
        # MXU-aligned tiles; tk as big as a ~4 MiB f32 s-tile allows (fits all gens,
        # including v7x's smaller VMEM).
        b_pad = _round_up(b, 128)
        n = 2 * b_pad
        tm = 512 if n % 512 == 0 else 256
        tk = tm
        for cand in (4096, 2048, 1024, 512, 256):
            if (n % cand == 0 and cand >= tm
                    and tm * cand * 4 <= 4 * 1024 * 1024
                    and cand * d_pad * 2 <= 8 * 1024 * 1024):
                tk = cand
                break
    lw = 128 if tk % 128 == 0 else tk

    pad_rows = b_pad - b
    pad_d = d_pad - d
    if pad_rows or pad_d:
        z_i = jnp.pad(z_i, ((0, pad_rows), (0, pad_d)))
        z_j = jnp.pad(z_j, ((0, pad_rows), (0, pad_d)))

    inv_sqrt_temp = 1.0 / math.sqrt(float(temperature))
    inv_t = 1.0 / float(temperature)
    pad_corr = 2.0 * pad_rows * math.exp(-inv_t)

    tb = b_pad if b_pad <= 512 else _pick_divisor(b_pad, (512, 256, 128), 128)

    # ---- kernel 1: normalize + scale + bf16 cast + positives ----
    zn2, pos2 = pl.pallas_call(
        functools.partial(_prep_kernel, inv_sqrt_temp=inv_sqrt_temp),
        out_shape=(jax.ShapeDtypeStruct((2, b_pad, d_pad), jnp.bfloat16),
                   jax.ShapeDtypeStruct((2, b_pad, 1), jnp.float32)),
        grid_spec=pltpu.PrefetchScalarGridSpec(
            num_scalar_prefetch=0,
            grid=(b_pad // tb,),
            in_specs=[pl.BlockSpec((tb, d_pad), lambda r: (r, 0)),
                      pl.BlockSpec((tb, d_pad), lambda r: (r, 0))],
            out_specs=(pl.BlockSpec((2, tb, d_pad), lambda r: (0, r, 0)),
                       pl.BlockSpec((2, tb, 1), lambda r: (0, r, 0)))),
        compiler_params=pltpu.CompilerParams(
            dimension_semantics=("parallel",)),
    )(z_i, z_j)

    n = 2 * b_pad
    zn = zn2.reshape(n, d_pad)    # [z_i_norm ; pad ; z_j_norm ; pad] — contiguous
    pos = pos2.reshape(n, 1)

    grid = (n // tm, n // tk)
    cost = pl.CostEstimate(
        flops=2 * n * n * d_pad,
        transcendentals=n * n,
        bytes_accessed=grid[0] * n * d_pad * 2 + n * d_pad * 2 + 8 * n)

    # VMEM limit derived from actual block sizes (q/k double buffers, pos/out, the
    # lane-partial accumulator, and headroom for the (tm, tk) f32 intermediates).
    vmem_bytes = (2 * tm * d_pad * 2 + 2 * tk * d_pad * 2
                  + 4 * tm * 4
                  + tm * lw * 4
                  + 4 * tm * tk * 4
                  + (4 << 20))
    vmem_limit = int(min(max(vmem_bytes, 16 << 20), 48 << 20))

    # ---- kernel 2: tiled sim + fixed-max logsumexp ----
    row_loss = pl.pallas_call(
        functools.partial(_ntxent_tile_kernel, tm=tm, tk=tk, lw=lw,
                          inv_t=inv_t, pad_corr=pad_corr),
        out_shape=jax.ShapeDtypeStruct((n, 1), jnp.float32),
        grid_spec=pltpu.PrefetchScalarGridSpec(
            num_scalar_prefetch=0,
            grid=grid,
            in_specs=[pl.BlockSpec((tm, d_pad), lambda i, k: (i, 0)),
                      pl.BlockSpec((tk, d_pad), lambda i, k: (k, 0)),
                      pl.BlockSpec((tm, 1), lambda i, k: (i, 0))],
            out_specs=pl.BlockSpec((tm, 1), lambda i, k: (i, 0)),
            scratch_shapes=[pltpu.VMEM((tm, lw), jnp.float32)]),
        compiler_params=pltpu.CompilerParams(
            dimension_semantics=("parallel", "arbitrary"),
            vmem_limit_bytes=vmem_limit),
        cost_estimate=cost,
    )(zn, zn, pos)   # q and k both stream from zn (3 specs -> 3 inputs)

    row_loss = row_loss[:, 0]
    # Mean over the 2B real rows: [0, B) is the z_i half, [b_pad, b_pad + B) the z_j half.
    return (jnp.sum(row_loss[0:b]) + jnp.sum(row_loss[b_pad:b_pad + b])) / (2.0 * b)


def _reference_loss(z_i, z_j, temperature):
    # Pure-JAX f32 reference mirroring the PyTorch module.
    def _norm(x):
        return x / jnp.maximum(jnp.linalg.norm(x, axis=1, keepdims=True), 1e-12)
    zi = _norm(z_i.astype(jnp.float32))
    zj = _norm(z_j.astype(jnp.float32))
    z = jnp.concatenate([zi, zj], axis=0)
    nb = z.shape[0]
    sim = (z @ z.T) / temperature
    sim = jnp.where(jnp.eye(nb, dtype=bool), -1e9, sim)
    bsz = nb // 2
    pos = sim[jnp.arange(nb), (jnp.arange(nb) + bsz) % nb]
    lse = jax.scipy.special.logsumexp(sim, axis=1)
    return jnp.mean(lse - pos)


if __name__ == "__main__":
    B, D = 8, 32  # batch_size, embedding_dim
    key = jax.random.PRNGKey(0)
    k1, k2 = jax.random.split(key)
    z_i = jax.random.normal(k1, (B, D), dtype=jnp.float32)
    z_j = jax.random.normal(k2, (B, D), dtype=jnp.float32)

    loss = jax.block_until_ready(ntxent_loss(z_i, z_j, temperature=0.5))
    ref = jax.block_until_ready(_reference_loss(z_i, z_j, 0.5))
    # bf16 MXU operands -> loose but safe tolerance.
    assert abs(float(loss) - float(ref)) < 5e-2, (float(loss), float(ref))
    print("KERNEL_OK")
</pallas_src>

<mosaic_0001>
module attributes {stable_mosaic.version = 11 : i64} {
  func.func @_prep_kernel(%arg0: i32, %arg1: memref<8x128xf32, #tpu.memory_space<vmem>>, %arg2: memref<8x128xf32, #tpu.memory_space<vmem>>, %arg3: memref<2x8x128xbf16, #tpu.memory_space<vmem>>, %arg4: memref<2x8x1xf32, #tpu.memory_space<vmem>>) attributes {dimension_semantics = [#tpu.dimension_semantics<parallel>], iteration_bounds = array<i64: 1>, scalar_prefetch = 0 : i64, scratch_operands = 0 : i64, tpu.core_type = #tpu.core_type<tc>, window_params = [{transform_indices = @transform_0, window_bounds = array<i64: 8, 128>}, {transform_indices = @transform_1, window_bounds = array<i64: 8, 128>}, {transform_indices = @transform_2, window_bounds = array<i64: 2, 8, 128>}, {transform_indices = @transform_3, window_bounds = array<i64: 2, 8, 1>}]} {
    %c0 = arith.constant 0 : index
    %c0_0 = arith.constant 0 : index
    %0 = vector.load %arg1[%c0, %c0_0] : memref<8x128xf32, #tpu.memory_space<vmem>>, vector<8x128xf32>
    %c0_1 = arith.constant 0 : index
    %c0_2 = arith.constant 0 : index
    %1 = vector.load %arg2[%c0_1, %c0_2] : memref<8x128xf32, #tpu.memory_space<vmem>>, vector<8x128xf32>
    %2 = arith.mulf %0, %0 : vector<8x128xf32>
    %cst = arith.constant dense<0.000000e+00> : vector<8xf32>
    %3 = vector.multi_reduction <add>, %2, %cst [1] : vector<8x128xf32> to vector<8xf32>
    %4 = vector.shape_cast %3 : vector<8xf32> to vector<8x1xf32>
    %cst_3 = arith.constant 1.000000e-24 : f32
    %5 = vector.broadcast %cst_3 : f32 to vector<8x1xf32>
    %6 = arith.maximumf %4, %5 : vector<8x1xf32>
    %7 = math.rsqrt %6 : vector<8x1xf32>
    %cst_4 = arith.constant 1.41421354 : f32
    %8 = vector.broadcast %cst_4 : f32 to vector<8x1xf32>
    %9 = arith.mulf %7, %8 : vector<8x1xf32>
    %10 = vector.broadcast %9 : vector<8x1xf32> to vector<8x128xf32>
    %11 = arith.mulf %0, %10 : vector<8x128xf32>
    %12 = arith.truncf %11 : vector<8x128xf32> to vector<8x128xbf16>
    %13 = arith.mulf %1, %1 : vector<8x128xf32>
    %cst_5 = arith.constant dense<0.000000e+00> : vector<8xf32>
    %14 = vector.multi_reduction <add>, %13, %cst_5 [1] : vector<8x128xf32> to vector<8xf32>
    %15 = vector.shape_cast %14 : vector<8xf32> to vector<8x1xf32>
    %cst_6 = arith.constant 1.000000e-24 : f32
    %16 = vector.broadcast %cst_6 : f32 to vector<8x1xf32>
    %17 = arith.maximumf %15, %16 : vector<8x1xf32>
    %18 = math.rsqrt %17 : vector<8x1xf32>
    %cst_7 = arith.constant 1.41421354 : f32
    %19 = vector.broadcast %cst_7 : f32 to vector<8x1xf32>
    %20 = arith.mulf %18, %19 : vector<8x1xf32>
    %21 = vector.broadcast %20 : vector<8x1xf32> to vector<8x128xf32>
    %22 = arith.mulf %1, %21 : vector<8x128xf32>
    %23 = arith.truncf %22 : vector<8x128xf32> to vector<8x128xbf16>
    %c0_8 = arith.constant 0 : index
    %c0_9 = arith.constant 0 : index
    %c0_10 = arith.constant 0 : index
    %24 = vector.load %arg3[%c0_8, %c0_9, %c0_10] : memref<2x8x128xbf16, #tpu.memory_space<vmem>>, vector<1x8x128xbf16>
    %25 = vector.shape_cast %24 : vector<1x8x128xbf16> to vector<8x128xbf16>
    %26 = vector.shape_cast %12 : vector<8x128xbf16> to vector<1x8x128xbf16>
    tpu.vector_store %arg3[%c0_8, %c0_9, %c0_10], %26 {strides = array<i32>} : memref<2x8x128xbf16, #tpu.memory_space<vmem>>, vector<1x8x128xbf16>,
    %c1 = arith.constant 1 : index
    %c0_11 = arith.constant 0 : index
    %c0_12 = arith.constant 0 : index
    %27 = vector.load %arg3[%c1, %c0_11, %c0_12] : memref<2x8x128xbf16, #tpu.memory_space<vmem>>, vector<1x8x128xbf16>
    %28 = vector.shape_cast %27 : vector<1x8x128xbf16> to vector<8x128xbf16>
    %29 = vector.shape_cast %23 : vector<8x128xbf16> to vector<1x8x128xbf16>
    tpu.vector_store %arg3[%c1, %c0_11, %c0_12], %29 {strides = array<i32>} : memref<2x8x128xbf16, #tpu.memory_space<vmem>>, vector<1x8x128xbf16>,
    %30 = arith.extf %12 : vector<8x128xbf16> to vector<8x128xf32>
    %31 = arith.extf %23 : vector<8x128xbf16> to vector<8x128xf32>
    %32 = arith.mulf %30, %31 : vector<8x128xf32>
    %cst_13 = arith.constant dense<0.000000e+00> : vector<8xf32>
    %33 = vector.multi_reduction <add>, %32, %cst_13 [1] : vector<8x128xf32> to vector<8xf32>
    %34 = vector.shape_cast %33 : vector<8xf32> to vector<8x1xf32>
    %c0_14 = arith.constant 0 : index
    %c0_15 = arith.constant 0 : index
    %c0_16 = arith.constant 0 : index
    %35 = vector.load %arg4[%c0_14, %c0_15, %c0_16] : memref<2x8x1xf32, #tpu.memory_space<vmem>>, vector<1x8x1xf32>
    %36 = vector.shape_cast %35 : vector<1x8x1xf32> to vector<8x1xf32>
    %37 = vector.shape_cast %34 : vector<8x1xf32> to vector<1x8x1xf32>
    tpu.vector_store %arg4[%c0_14, %c0_15, %c0_16], %37 {strides = array<i32>} : memref<2x8x1xf32, #tpu.memory_space<vmem>>, vector<1x8x1xf32>,
    %c1_17 = arith.constant 1 : index
    %c0_18 = arith.constant 0 : index
    %c0_19 = arith.constant 0 : index
    %38 = vector.load %arg4[%c1_17, %c0_18, %c0_19] : memref<2x8x1xf32, #tpu.memory_space<vmem>>, vector<1x8x1xf32>
    %39 = vector.shape_cast %38 : vector<1x8x1xf32> to vector<8x1xf32>
    %40 = vector.shape_cast %34 : vector<8x1xf32> to vector<1x8x1xf32>
    tpu.vector_store %arg4[%c1_17, %c0_18, %c0_19], %40 {strides = array<i32>} : memref<2x8x1xf32, #tpu.memory_space<vmem>>, vector<1x8x1xf32>,
    return
  }
  func.func @transform_0(%arg0: i32) -> (i32, i32) {
    %c0_i32 = arith.constant 0 : i32
    %c0_i32_0 = arith.constant 0 : i32
    return %arg0, %c0_i32 : i32, i32
  }
  func.func @transform_1(%arg0: i32) -> (i32, i32) {
    %c0_i32 = arith.constant 0 : i32
    %c0_i32_0 = arith.constant 0 : i32
    return %arg0, %c0_i32 : i32, i32
  }
  func.func @transform_2(%arg0: i32) -> (i32, i32, i32) {
    %c0_i32 = arith.constant 0 : i32
    %c0_i32_0 = arith.constant 0 : i32
    %c0_i32_1 = arith.constant 0 : i32
    return %c0_i32, %arg0, %c0_i32_0 : i32, i32, i32
  }
  func.func @transform_3(%arg0: i32) -> (i32, i32, i32) {
    %c0_i32 = arith.constant 0 : i32
    %c0_i32_0 = arith.constant 0 : i32
    %c0_i32_1 = arith.constant 0 : i32
    return %c0_i32, %arg0, %c0_i32_0 : i32, i32, i32
  }
}

</mosaic_0001>

<bundles_post_ra>
// kernel: tpu_custom_call.1
= control target key start
LH: loop header
LB: loop body
LE: loop exit
PB: predicated region body
PF: predicated region fallthrough
CT: control target
= control target key end

     0   :  { %9 = vsyncpa [#allocation3], 0  ;;  %s211_s0 = inlined_call_operand.hbm [shape: f32[8,128], index: 0, kind: input, shape index: {}]   ;;  %s212_s1 = inlined_call_operand.hbm [shape: f32[8,128], index: 1, kind: input, shape index: {}]   ;;  %s213_s2 = inlined_call_operand.hbm [shape: bf16[2,8,128], index: 2, kind: output, shape index: {0}]   ;;  %s214_s3 = inlined_call_operand.vmem [shape: f32[2,8,1], index: 3, kind: output, shape index: {1}]  }
   0x1   :  { %10 = vsyncpa [#allocation6], 0 }
   0x2   :  { %11 = vsyncpa [#allocation4], 0  ;;  %s171_s12 = smov [#allocation2]   ;;  %s172_s14 = smov [#allocation5]  }
   0x3   :  { %s18_s13 = sshll.u32 %s171_s12, 4  ;;  %s28_s15 = sshll.u32 %s172_s14, 4  ;;  %s19_s13 = int_to_ptr.vmem [resolvable:$true] %s18_s13  ;;  %s29_s15 = int_to_ptr.vmem [resolvable:$true] %s28_s15 }
   0x4   :  { %s113_s16 = scalar_lea.vmem %s19_s13, 128  ;;  %p118_p1 = scmp.lt.s32.totalorder %s19_s13, %s19_s13 }
   0x5   :  { %p114_p0 = scmp.ne.s32.totalorder %s19_s13, %s113_s16  ;;  %p119_p2 = scmp.lt.s32.totalorder %s113_s16, %s113_s16 }
   0x7   :  { %p120_p3 = por %p119_p2, %p118_p1 }
   0x9   :  { %p121_p4 = pnand %p120_p3, %p114_p0 }
   0xb   :  { %124 = shalt.err (!%p121_p4)
}
   0xc   :  { %21 = dma.hbm_to_vmem [thread:$0]  %s211_s0, 128, %s19_s13, [#allocation3]  }
   0xd   :  { %s133_s19 = scalar_lea.vmem %s29_s15, 128  ;;  %p138_p6 = scmp.lt.s32.totalorder %s29_s15, %s29_s15 }
   0xe   :  { %p134_p5 = scmp.ne.s32.totalorder %s29_s15, %s133_s19  ;;  %p139_p7 = scmp.lt.s32.totalorder %s133_s19, %s133_s19 }
  0x10   :  { %p140_p8 = por %p139_p7, %p138_p6 }
  0x12   :  { %p141_p9 = pnand %p140_p8, %p134_p5 }
  0x14   :  { %144 = shalt.err (!%p141_p9)
}
  0x15   :  { %31 = dma.hbm_to_vmem [thread:$0]  %s212_s1, 128, %s29_s15, [#allocation6]  }
  0x16   :  { %165 = dma.done.wait [#allocation3], 128  }
  0x17   :  { %166 = vsyncadd [#allocation3], 4294967168 }
  0x18   :  { %167 = dma.done.wait [#allocation6], 128  }
  0x19   :  { %168 = vsyncadd [#allocation6], 4294967168  ;;  %v38_v0 = vld [vmem:[#allocation2] sm:$0xff]  ;;  %v39_v1 = vld [vmem:[#allocation5] sm:$0xff]  ;;  %s173_s0 = smov [#allocation7]  }
  0x1a   :  { %v40_v2 = vmul.f32 %v38_v0, %v38_v0  ;;  %v48_v3 = vmul.f32 %v39_v1, %v39_v1  ;;  %s73_s1 = sshll.u32 %s173_s0, 4  ;;  %s74_s1 = int_to_ptr.vmem [resolvable:$true] %s73_s1 }
  0x1b   :  { %s145_s22 = scalar_lea.vmem %s74_s1, 128  ;;  %p150_p11 = scmp.lt.s32.totalorder %s74_s1, %s74_s1 }
  0x1c   :  { %41 = vadd.xlane.f32.xlu0 %v40_v2  ;;  %p146_p10 = scmp.ne.s32.totalorder %s74_s1, %s145_s22  ;;  %p151_p12 = scmp.lt.s32.totalorder %s145_s22, %s145_s22 }
  0x1e   :  { %p152_p13 = por %p151_p12, %p150_p11 }
  0x20   :  { %49 = vadd.xlane.f32.xlu0 %v48_v3  ;;  %p153_p0 = pnand %p152_p13, %p146_p10 }
  0xa5   :  { %v42_v4 = vpop.xlane.xlu0 %41 }
  0xa6   :  { %v43_v5 = vmax.f32 %v42_v4, 1e-24 }
  0xa8   :  { %101 = vrsqrt.f32 %v43_v5 }
  0xa9   :  { %v50_v6 = vpop.xlane.xlu0 %49 }
  0xaa   :  { %v51_v7 = vmax.f32 %v50_v6, 1e-24 }
  0xac   :  { %103 = vrsqrt.f32 %v51_v7 }
  0xb5   :  { %v102_v8 = vpop.eup %101 }
  0xb6   :  { %v45_v9 = vmul.f32 1.4142135, %v102_v8 }
  0xb8   :  { %v46_v10 = vmul.f32 %v45_v9, %v38_v0 }
  0xb9   :  { %v104_v11 = vpop.eup %103 }
  0xba   :  { %v53_v12 = vmul.f32 1.4142135, %v104_v11  ;;  %v47_v13 = vpack.c.bf16 %v46_v10, %v46_v10 }
  0xbc   :  { %v54_v14 = vmul.f32 %v53_v12, %v39_v1  ;;  %v59_v17 = vunpack.c.l.bf16 %v47_v13 }
  0xbe   :  { %v55_v15 = vpack.c.bf16 %v54_v14, %v54_v14  ;;  %v94_v16 = vpack.c.bf16 %v54_v14, %v46_v10 }
  0xc0   :  { %v60_v18 = vunpack.c.l.bf16 %v55_v15  ;;  %95 = vst [vmem:[#allocation7] sm:$0xff] %v94_v16  }
  0xc2   :  { %v61_v19 = vmul.f32 %v60_v18, %v59_v17 }
  0xc4   :  { %62 = vadd.xlane.f32.xlu1 %v61_v19 }
  0xc5   :  { %156 = shalt.err (!%p153_p0)
}
  0xc6   :  { %s174_s23 = smov 64   ;;  %s175_s24 = smov 4   ;;  %vm64_vm0 = vcmask 7168  }
  0xc7   :  { %79 = dma.vmem_to_hbm [thread:$0]  %s74_s1, 128, %s213_s2, [#allocation4], %s174_s23, %s174_s23, %s175_s24  }
 0x14d   :  { %v63_v20 = vpop.xlane.xlu1 %62 }
 0x14e   :  { %65 = vst.msk [vmem:[%s214_s3] sm:$0xff] %vm64_vm0, %v63_v20  ;;  %90 = vst.msk [vmem:[%s214_s3 + $0x8] sm:$0xff] %vm64_vm0, %v63_v20 }
 0x14f   :  { %169 = dma.done.wait [#allocation4], 128  }
 0x150   :  { %170 = vsyncadd [#allocation4], 4294967168 }
 0x151   :  { %87 = vsyncpa [#allocation3], 1 }
 0x152   :  { %88 = vsyncpa [#allocation6], 1 }
 0x153   :  { %89 = vsyncpa [#allocation4], 1 }

</bundles_post_ra>
